<compile_context>
chip_gen: v6e
topology: v6e:2x2x1
jax: 0.10.0
libtpu: 0.0.40
codegen_flags: <defaults>
</compile_context>

<pallas_src>
import math

import jax
import jax.numpy as jnp
from jax.experimental import pallas as pl
from jax.experimental.pallas import tpu as pltpu


_TARGET_BLOCK_BYTES = 2 * 1024 * 1024   # ~2 MiB x-block: good HBM-roofline fraction
_MAX_BLOCK_ELEMS = 1_500_000            # keep 16*TM*L bytes << v7x 32 MiB scoped VMEM
_MAX_FLAT_LANES = 16384                 # give up on flattening if lcm(dim,128) explodes


# ----------------------------- Pallas kernel ------------------------------ #
def _affine_const_kernel(x_ref, params_ref, z_ref):
    """z = x * scale + shift for one lane-dense tile.

    x_ref      : (TM, L)  activation tile (streamed, double-buffered)
    params_ref : (2, L)   row 0 = exp(log_scale), row 1 = shift
                          (pre-tiled to L lanes, VMEM-resident across steps)
    z_ref      : (TM, L)  output tile (lane-dense -> full-width vst)
    """
    scale = params_ref[0:1, :]
    shift = params_ref[1:2, :]
    z_ref[...] = (x_ref[...] * scale + shift).astype(z_ref.dtype)


# ------------------------------- wrapper ----------------------------------- #
def _choose_tm(rows, lanes):
    """Row-tile size: byte-targeted, >=2 grid steps, VMEM-safe on all gens."""
    if rows <= 8:
        return rows                                       # single tiny block
    tm = _TARGET_BLOCK_BYTES // (4 * lanes)
    tm = max(8, (tm // 8) * 8)
    cap = max(8, ((_MAX_BLOCK_ELEMS // lanes) // 8) * 8)  # v7x scoped-VMEM cap
    tm = min(tm, cap)
    half = ((rows // 2) // 8) * 8                         # ensure >=2 grid steps
    tm = min(tm, half) if half >= 8 else 8
    return tm


def _flat_layout(dim):
    """Lane-dense flat layout: returns (L, reps) with L % 128 == 0, L == reps*dim,
    or (None, None) if the natural layout is already lane-dense / not worth it."""
    if dim % 128 == 0:
        return None, None
    L = (dim * 128) // math.gcd(dim, 128)                 # lcm(dim, 128)
    while L < 512:
        L *= 2
    if L > _MAX_FLAT_LANES:
        return None, None                                 # ragged-lane fallback
    return L, L // dim


def affine_constant_forward(x, log_scale, shift):
    """Mirrors AffineConstantFlow.forward: returns (z, log_det)."""
    m, dim = x.shape

    # Parameter-only work done once in the wrapper (not per grid step).
    scale = jnp.exp(log_scale).astype(jnp.float32)        # (1, dim)
    shift_f = shift.astype(jnp.float32)                   # (1, dim)
    log_det = jnp.sum(log_scale, axis=1)                  # (1,)  tiny XLA op

    L, reps = _flat_layout(dim)
    if L is None:
        rows, lanes = m, dim
        x_flat = x
        params = jnp.concatenate([scale, shift_f], axis=0)            # (2, dim)
    else:
        rows = (m + reps - 1) // reps
        m_pad = rows * reps
        x_pad = x if m_pad == m else jnp.pad(x, ((0, m_pad - m), (0, 0)))
        x_flat = x_pad.reshape(rows, L)                                # lane-dense view
        lanes = L
        params = jnp.concatenate(
            [jnp.tile(scale, (1, reps)), jnp.tile(shift_f, (1, reps))], axis=0)  # (2, L)

    tile_m = _choose_tm(rows, lanes)
    grid = (pl.cdiv(rows, tile_m),)

    z_flat = pl.pallas_call(
        _affine_const_kernel,
        out_shape=jax.ShapeDtypeStruct((rows, lanes), x.dtype),
        grid=grid,
        in_specs=[
            pl.BlockSpec((tile_m, lanes), lambda i: (i, 0)),   # x: streamed row tiles
            pl.BlockSpec((2, lanes), lambda i: (0, 0)),        # params: VMEM-resident
        ],
        out_specs=pl.BlockSpec((tile_m, lanes), lambda i: (i, 0)),  # z: lane-dense
        compiler_params=pltpu.CompilerParams(
            # Batch tiles are independent -> shard across TensorCores on v7x.
            dimension_semantics=("parallel",),
        ),
    )(x_flat, params)

    z = z_flat if L is None else z_flat.reshape(-1, dim)[:m]
    return z, log_det


# ------------------------------ pure-JAX ref ------------------------------- #
def reference_forward(x, log_scale, shift):
    z = x * jnp.exp(log_scale) + shift
    log_det = jnp.sum(log_scale, axis=1)
    return z, log_det


# ----------------------------------- main ---------------------------------- #
if __name__ == "__main__":
    key = jax.random.PRNGKey(0)
    m, dim = 16, 8                                   # small, module-consistent

    kx, ks, kt = jax.random.split(key, 3)
    x = jax.random.normal(kx, (m, dim), jnp.float32)
    log_scale = jax.random.normal(ks, (1, dim), jnp.float32)
    shift = jax.random.normal(kt, (1, dim), jnp.float32)

    z, log_det = affine_constant_forward(x, log_scale, shift)
    jax.block_until_ready(z)
    jax.block_until_ready(log_det)

    z_ref, ld_ref = reference_forward(x, log_scale, shift)
    assert z.shape == (m, dim)
    assert log_det.shape == (1,)
    assert jnp.allclose(z, z_ref, atol=1e-5, rtol=1e-5)
    assert jnp.allclose(log_det, ld_ref, atol=1e-5, rtol=1e-5)

    print("KERNEL_OK")
</pallas_src>

<mosaic_0001>
module attributes {stable_mosaic.version = 11 : i64} {
  func.func @_affine_const_kernel(%arg0: i32, %arg1: memref<1x512xf32, #tpu.memory_space<vmem>>, %arg2: memref<2x512xf32, #tpu.memory_space<vmem>>, %arg3: memref<1x512xf32, #tpu.memory_space<vmem>>) attributes {dimension_semantics = [#tpu.dimension_semantics<parallel>], iteration_bounds = array<i64: 1>, scalar_prefetch = 0 : i64, scratch_operands = 0 : i64, tpu.core_type = #tpu.core_type<tc>, window_params = [{transform_indices = @transform_0, window_bounds = array<i64: 1, 512>}, {pipeline_mode = #tpu.pipeline_mode<synchronous>, transform_indices = @transform_1, window_bounds = array<i64: 2, 512>}, {transform_indices = @transform_2, window_bounds = array<i64: 1, 512>}]} {
    %c0 = arith.constant 0 : index
    %c0_0 = arith.constant 0 : index
    %0 = vector.load %arg2[%c0, %c0_0] : memref<2x512xf32, #tpu.memory_space<vmem>>, vector<1x512xf32>
    %c1 = arith.constant 1 : index
    %c0_1 = arith.constant 0 : index
    %1 = vector.load %arg2[%c1, %c0_1] : memref<2x512xf32, #tpu.memory_space<vmem>>, vector<1x512xf32>
    %c0_2 = arith.constant 0 : index
    %c0_3 = arith.constant 0 : index
    %2 = vector.load %arg1[%c0_2, %c0_3] : memref<1x512xf32, #tpu.memory_space<vmem>>, vector<1x512xf32>
    %3 = arith.mulf %2, %0 : vector<1x512xf32>
    %4 = arith.addf %3, %1 : vector<1x512xf32>
    %c0_4 = arith.constant 0 : index
    %c0_5 = arith.constant 0 : index
    %5 = vector.load %arg3[%c0_4, %c0_5] : memref<1x512xf32, #tpu.memory_space<vmem>>, vector<1x512xf32>
    tpu.vector_store %arg3[%c0_4, %c0_5], %4 {strides = array<i32>} : memref<1x512xf32, #tpu.memory_space<vmem>>, vector<1x512xf32>,
    return
  }
  func.func @transform_0(%arg0: i32) -> (i32, i32) {
    %c0_i32 = arith.constant 0 : i32
    %c0_i32_0 = arith.constant 0 : i32
    return %arg0, %c0_i32 : i32, i32
  }
  func.func @transform_1(%arg0: i32) -> (i32, i32) {
    %c0_i32 = arith.constant 0 : i32
    %c0_i32_0 = arith.constant 0 : i32
    %c0_i32_1 = arith.constant 0 : i32
    return %c0_i32, %c0_i32_0 : i32, i32
  }
  func.func @transform_2(%arg0: i32) -> (i32, i32) {
    %c0_i32 = arith.constant 0 : i32
    %c0_i32_0 = arith.constant 0 : i32
    return %arg0, %c0_i32 : i32, i32
  }
}

</mosaic_0001>

<bundles_post_ra>
// kernel: tpu_custom_call.1
= control target key start
LH: loop header
LB: loop body
LE: loop exit
PB: predicated region body
PF: predicated region fallthrough
CT: control target
= control target key end

     0   :  { %7 = vsyncpa [#allocation3], 0  ;;  %s159_s0 = inlined_call_operand.hbm [shape: f32[1,512], index: 0, kind: input, shape index: {}]   ;;  %s160_s1 = inlined_call_operand.hbm [shape: f32[2,512], index: 1, kind: input, shape index: {}]   ;;  %s161_s2 = inlined_call_operand.hbm [shape: f32[1,512], index: 2, kind: output, shape index: {}]  }
   0x1   :  { %8 = vsyncpa [#allocation6], 0 }
   0x2   :  { %9 = vsyncpa [#allocation4], 0  ;;  %s132_s9 = smov [#allocation2]   ;;  %s133_s11 = smov [#allocation5]  }
   0x3   :  { %s16_s10 = sshll.u32 %s132_s9, 4  ;;  %s26_s12 = sshll.u32 %s133_s11, 4  ;;  %s17_s10 = int_to_ptr.vmem [resolvable:$true] %s16_s10  ;;  %s27_s12 = int_to_ptr.vmem [resolvable:$true] %s26_s12 }
   0x4   :  { %s74_s13 = scalar_lea.vmem %s17_s10, 64  ;;  %p79_p1 = scmp.lt.s32.totalorder %s17_s10, %s17_s10 }
   0x5   :  { %p75_p0 = scmp.ne.s32.totalorder %s17_s10, %s74_s13  ;;  %p80_p2 = scmp.lt.s32.totalorder %s74_s13, %s74_s13 }
   0x7   :  { %p81_p3 = por %p80_p2, %p79_p1 }
   0x9   :  { %p82_p4 = pnand %p81_p3, %p75_p0 }
   0xb   :  { %85 = shalt.err (!%p82_p4)
}
   0xc   :  { %19 = dma.hbm_to_vmem [thread:$0]  %s159_s0, 64, %s17_s10, [#allocation3]  }
   0xd   :  { %s94_s16 = scalar_lea.vmem %s27_s12, 128  ;;  %p99_p6 = scmp.lt.s32.totalorder %s27_s12, %s27_s12 }
   0xe   :  { %p95_p5 = scmp.ne.s32.totalorder %s27_s12, %s94_s16  ;;  %p100_p7 = scmp.lt.s32.totalorder %s94_s16, %s94_s16 }
  0x10   :  { %p101_p8 = por %p100_p7, %p99_p6 }
  0x12   :  { %p102_p9 = pnand %p101_p8, %p95_p5 }
  0x14   :  { %105 = shalt.err (!%p102_p9)
}
  0x15   :  { %29 = dma.hbm_to_vmem [thread:$0]  %s160_s1, 128, %s27_s12, [#allocation6]  }
  0x16   :  { %126 = dma.done.wait [#allocation3], 64  }
  0x17   :  { %127 = vsyncadd [#allocation3], 4294967232 }
  0x18   :  { %128 = dma.done.wait [#allocation6], 128  }
  0x19   :  { %129 = vsyncadd [#allocation6], 4294967168  ;;  %v42_v0 = vlaneseq  ;;  %v36_v1 = vld [vmem:[#allocation5] ss:$2 sm:$0xf]  ;;  %s134_s0 = smov [#allocation7]  }
  0x1a   :  { %v38_v2 = vld [vmem:[#allocation5 + $0x1] ss:$2 sm:$0xf]  ;;  %v39_v3 = vld [vmem:[#allocation2] sm:$0xf]  ;;  %s53_s19 = sshll.u32 %s134_s0, 4  ;;  %s54_s19 = int_to_ptr.vmem [resolvable:$true] %s53_s19 }
  0x1b   :  { %v40_v4 = vmul.f32 %v39_v3, %v36_v1  ;;  %vm44_vm0 = vcmp.lt.s32.totalorder %v42_v0, 512  ;;  %s106_s20 = scalar_lea.vmem %s54_s19, 64  ;;  %p111_p11 = scmp.lt.s32.totalorder %s54_s19, %s54_s19 }
  0x1c   :  { %p107_p10 = scmp.ne.s32.totalorder %s54_s19, %s106_s20  ;;  %p112_p12 = scmp.lt.s32.totalorder %s106_s20, %s106_s20 }
  0x1d   :  { %v41_v5 = vadd.f32 %v40_v4, %v38_v2 }
  0x1e   :  { %p113_p13 = por %p112_p12, %p111_p11 }
  0x1f   :  { %46 = vst.msk [vmem:[#allocation7] sm:$0xf] %vm44_vm0, %v41_v5 }
  0x20   :  { %p114_p0 = pnand %p113_p13, %p107_p10 }
  0x22   :  { %117 = shalt.err (!%p114_p0)
}
  0x23   :  { %56 = dma.vmem_to_hbm [thread:$0]  %s54_s19, 64, %s161_s2, [#allocation4]  }
  0x24   :  { %130 = dma.done.wait [#allocation4], 64  }
  0x25   :  { %131 = vsyncadd [#allocation4], 4294967232 }
  0x26   :  { %60 = vsyncpa [#allocation3], 1 }
  0x27   :  { %61 = vsyncpa [#allocation6], 1 }
  0x28   :  { %62 = vsyncpa [#allocation4], 1 }

</bundles_post_ra>
